<compile_context>
chip_gen: v5e
topology: v5e:2x2
jax: 0.10.0
libtpu: 0.0.40
codegen_flags: <defaults>
</compile_context>

<pallas_src>
import functools

import jax
import jax.numpy as jnp
from jax.experimental import pallas as pl
from jax.experimental.pallas import tpu as pltpu


def _round_up(v, m):
    return ((v + m - 1) // m) * m


def _device_kind():
    try:
        return jax.devices()[0].device_kind.lower()
    except Exception:  # pragma: no cover - CPU/interpret fallbacks
        return ""


def _vmem_cap_bytes(kind):
    # v7x: 64 MiB physical per TensorCore -> leave headroom for Mosaic scratch.
    if ("v7" in kind) or ("tpu7" in kind):
        return 44 * 1024 * 1024
    # v5e / v6e: 128 MiB physical, scoped default is only 16/32 MiB.
    if ("v5" in kind) or ("v6" in kind):
        return 96 * 1024 * 1024
    # Unknown generation: conservative.
    return 48 * 1024 * 1024


# ----------------------------- kernels ------------------------------------ #


def _nrb_kernel_fullk(*refs, residual: bool):
    """Single-K path: whole K panel resident, no accumulator scratch."""
    if residual:
        x_ref, wt_ref, shift_ref, res_ref, o_ref = refs
    else:
        x_ref, wt_ref, shift_ref, o_ref = refs
        res_ref = None
    y = jnp.dot(x_ref[...], wt_ref[...], preferred_element_type=jnp.float32)
    y = y + shift_ref[...]                 # folded bias + BN shift
    y = jnp.maximum(y, 0.0)                # ReLU (Dropout is identity in eval)
    if residual:
        y = y + res_ref[...].astype(jnp.float32)
    o_ref[...] = y.astype(o_ref.dtype)


def _nrb_kernel_tiledk(*refs, residual: bool):
    """K-tiled path with f32 VMEM accumulator."""
    if residual:
        x_ref, wt_ref, shift_ref, res_ref, o_ref, acc_ref = refs
    else:
        x_ref, wt_ref, shift_ref, o_ref, acc_ref = refs
        res_ref = None

    k = pl.program_id(2)

    @pl.when(k == 0)
    def _():
        # Seed the accumulator with the folded shift (off the finalize path).
        acc_ref[...] = jnp.broadcast_to(shift_ref[...], acc_ref.shape)

    acc_ref[...] += jnp.dot(x_ref[...], wt_ref[...],
                            preferred_element_type=jnp.float32)

    @pl.when(k == pl.num_programs(2) - 1)
    def _():
        y = jnp.maximum(acc_ref[...], 0.0)       # ReLU; Dropout(eval) == id
        if residual:
            y = y + res_ref[...].astype(jnp.float32)
        o_ref[...] = y.astype(o_ref.dtype)


# ------------------------------ wrapper ------------------------------------ #


class NoiseResistantBlockKernel:
    """Eval-mode NoiseResistantBlock forward as one fused Pallas TPU kernel.

    BatchNorm (running stats) + Linear bias are folded into the weight once at
    construction and cached; every forward call is a single fused
    matmul + shift + ReLU (+ residual) kernel.
    """

    def __init__(self, weight, bias, gamma, beta, running_mean, running_var, *,
                 eps=1e-5, use_residual=True, dropout_rate=0.3,
                 compute_dtype=jnp.bfloat16,
                 batch_tile=512, n_tile=256, k_tile=1024):
        del dropout_rate  # Dropout is identity in eval mode.
        f_out, f_in = weight.shape
        self.f_in, self.f_out = int(f_in), int(f_out)
        self.use_residual = bool(use_residual) and (self.f_in == self.f_out)
        self.compute_dtype = jnp.dtype(compute_dtype)
        self.batch_tile = int(batch_tile)

        kind = _device_kind()
        self.is_v7 = ("v7" in kind) or ("tpu7" in kind)
        self.vmem_cap = _vmem_cap_bytes(kind)

        citem = self.compute_dtype.itemsize
        self.citem = citem
        self.sub = 8 * max(1, 4 // citem)       # 8 rows f32, 16 rows bf16

        # ---- B-independent N / K tiling plan (so folded weights can be
        #      padded once and reused for every batch). ----
        self.tn = min(int(n_tile), _round_up(self.f_out, 128))
        self.n_pad = _round_up(self.f_out, self.tn)

        k_full = _round_up(self.f_in, 128)
        tb_max = _round_up(self.batch_tile, self.sub)
        full_k_need = self._vmem_need(tb_max, self.tn, k_full, with_acc=False)
        self.full_k = (k_full <= 2048) and (full_k_need <= self.vmem_cap // 2)
        if self.full_k:
            self.tk = k_full
        else:
            self.tk = min(_round_up(int(k_tile), 128), k_full)
        self.k_pad = _round_up(self.f_in, self.tk)

        # ---- fold BatchNorm1d (eval stats) + bias into the weight, ONCE ----
        w32 = weight.astype(jnp.float32)
        scale = gamma.astype(jnp.float32) * jax.lax.rsqrt(
            running_var.astype(jnp.float32) + eps)
        shift = beta.astype(jnp.float32) + (
            bias.astype(jnp.float32) - running_mean.astype(jnp.float32)) * scale
        wt = (w32 * scale[:, None]).T.astype(self.compute_dtype)  # [f_in, f_out]
        self.wt_p = jnp.pad(wt, ((0, self.k_pad - self.f_in),
                                 (0, self.n_pad - self.f_out)))
        self.shift_p = jnp.pad(shift, (0, self.n_pad - self.f_out)
                               ).reshape(1, self.n_pad)

    # VMEM estimate: double-buffered inputs/outputs (+ optional accumulator).
    def _vmem_need(self, tb, tn, tk, *, with_acc, out_item=4):
        need = 2 * (tb * tk + tk * tn) * self.citem    # x tile + W^T slab
        need += 2 * tn * 4                             # shift
        need += 2 * tb * tn * out_item                 # output tile
        if self.use_residual:
            need += 2 * tb * tn * self.citem           # residual tile
        if with_acc:
            need += tb * tn * 4                        # f32 accumulator
        return need

    def __call__(self, x):
        B, f_in = x.shape
        assert f_in == self.f_in, "feature-dim mismatch"
        out_dtype = x.dtype
        out_item = jnp.dtype(out_dtype).itemsize
        residual = self.use_residual

        tb = _round_up(min(self.batch_tile, _round_up(B, self.sub)), self.sub)
        b_pad = _round_up(B, tb)

        # v7x: make sure both TensorCores get work on the parallel axes.
        if (self.is_v7
                and (b_pad // tb) * (self.n_pad // self.tn) < 2
                and tb > self.sub):
            tb_half = max(self.sub, _round_up(tb // 2, self.sub))
            if _round_up(B, tb_half) // tb_half >= 2:
                tb = tb_half
                b_pad = _round_up(B, tb)

        grid_m = b_pad // tb
        grid_n = self.n_pad // self.tn
        grid_k = self.k_pad // self.tk

        # One padded copy of x, shared by the matmul tiles and the residual
        # tiles (no second HBM copy of the activations).
        pad_cols = max(self.k_pad, self.n_pad) if residual else self.k_pad
        x_p = jnp.pad(x.astype(self.compute_dtype),
                      ((0, b_pad - B), (0, pad_cols - f_in)))

        tn, tk = self.tn, self.tk

        if self.full_k:
            grid = (grid_m, grid_n)
            in_specs = [
                pl.BlockSpec((tb, tk), lambda i, j: (i, 0)),        # x panel
                pl.BlockSpec((tk, tn), lambda i, j: (0, j)),        # W^T slab
                pl.BlockSpec((1, tn), lambda i, j: (0, j)),         # shift
            ]
            operands = [x_p, self.wt_p, self.shift_p]
            if residual:
                in_specs.append(pl.BlockSpec((tb, tn), lambda i, j: (i, j)))
                operands.append(x_p)                                # shared!
            out_specs = pl.BlockSpec((tb, tn), lambda i, j: (i, j))
            scratch = []
            kernel = functools.partial(_nrb_kernel_fullk, residual=residual)
            dims = ("parallel", "parallel")
            x_bytes = b_pad * self.k_pad * self.citem     # read once per i
        else:
            grid = (grid_m, grid_n, grid_k)
            in_specs = [
                pl.BlockSpec((tb, tk), lambda i, j, k: (i, k)),
                pl.BlockSpec((tk, tn), lambda i, j, k: (k, j)),
                pl.BlockSpec((1, tn), lambda i, j, k: (0, j)),
            ]
            operands = [x_p, self.wt_p, self.shift_p]
            if residual:
                in_specs.append(pl.BlockSpec((tb, tn), lambda i, j, k: (i, j)))
                operands.append(x_p)
            out_specs = pl.BlockSpec((tb, tn), lambda i, j, k: (i, j))
            scratch = [pltpu.VMEM((tb, tn), jnp.float32)]
            kernel = functools.partial(_nrb_kernel_tiledk, residual=residual)
            dims = ("parallel", "parallel", "arbitrary")
            x_bytes = grid_n * b_pad * self.k_pad * self.citem  # re-streamed

        # Truthful (re-streaming-aware) advisory cost estimate.
        w_bytes = grid_m * self.k_pad * self.n_pad * self.citem
        bytes_accessed = (x_bytes + w_bytes + self.n_pad * 4
                          + b_pad * self.n_pad * out_item)
        if residual:
            bytes_accessed += b_pad * self.n_pad * self.citem
        cost = pl.CostEstimate(flops=2 * b_pad * self.k_pad * self.n_pad,
                               transcendentals=0,
                               bytes_accessed=int(bytes_accessed))

        need = self._vmem_need(tb, tn, tk, with_acc=not self.full_k,
                               out_item=out_item)
        vmem_limit = int(min(self.vmem_cap, max(32 * 1024 * 1024, 2 * need)))

        out_p = pl.pallas_call(
            kernel,
            out_shape=jax.ShapeDtypeStruct((b_pad, self.n_pad), out_dtype),
            grid=grid,
            in_specs=in_specs,
            out_specs=out_specs,
            scratch_shapes=scratch,
            compiler_params=pltpu.CompilerParams(
                dimension_semantics=dims,
                vmem_limit_bytes=vmem_limit),
            cost_estimate=cost,
        )(*operands)

        return out_p[:B, :self.f_out]


# ----------------------------- reference ----------------------------------- #


def _reference(x, weight, bias, gamma, beta, running_mean, running_var,
               eps=1e-5, use_residual=True):
    """Pure-JAX mirror of the PyTorch eval-mode forward."""
    residual = use_residual and (x.shape[1] == weight.shape[0])
    y = x @ weight.T + bias
    y = (y - running_mean) / jnp.sqrt(running_var + eps) * gamma + beta
    y = jnp.maximum(y, 0.0)
    if residual:
        y = y + x
    return y


if __name__ == "__main__":
    # Small shapes consistent with the module (input_size == output_size so
    # the residual path is active).
    B, F_IN, F_OUT = 16, 32, 32

    key = jax.random.PRNGKey(0)
    kx, kw, kb, kg, kbeta, kmean, kvar = jax.random.split(key, 7)

    x = jax.random.normal(kx, (B, F_IN), dtype=jnp.float32)
    weight = jax.random.normal(kw, (F_OUT, F_IN), dtype=jnp.float32) * 0.1
    bias = jax.random.normal(kb, (F_OUT,), dtype=jnp.float32) * 0.1
    gamma = 1.0 + 0.1 * jax.random.normal(kg, (F_OUT,), dtype=jnp.float32)
    beta = 0.1 * jax.random.normal(kbeta, (F_OUT,), dtype=jnp.float32)
    running_mean = 0.1 * jax.random.normal(kmean, (F_OUT,), dtype=jnp.float32)
    running_var = jnp.abs(1.0 + 0.1 * jax.random.normal(
        kvar, (F_OUT,), dtype=jnp.float32))

    ref1 = _reference(x, weight, bias, gamma, beta, running_mean, running_var,
                      use_residual=True)

    # 1) f32 MXU path: exact check against the reference.
    blk_f32 = NoiseResistantBlockKernel(
        weight, bias, gamma, beta, running_mean, running_var,
        use_residual=True, compute_dtype=jnp.float32)
    out_f32 = jax.block_until_ready(blk_f32(x))
    assert out_f32.shape == (B, F_OUT)
    assert jnp.allclose(out_f32, ref1, atol=1e-4, rtol=1e-4), \
        "f32 path mismatch vs reference"

    # 2) Default bf16-operand path: folded/padded weights cached once on the
    #    object, reused across calls (no per-call BN fold / transpose / pad).
    blk = NoiseResistantBlockKernel(
        weight, bias, gamma, beta, running_mean, running_var, use_residual=True)
    out1 = jax.block_until_ready(blk(x))
    x2 = x * 0.5
    out2 = jax.block_until_ready(blk(x2))
    ref2 = _reference(x2, weight, bias, gamma, beta, running_mean, running_var,
                      use_residual=True)
    assert out1.shape == (B, F_OUT)
    assert jnp.allclose(out1, ref1, atol=5e-2, rtol=5e-2), \
        "bf16 path mismatch vs reference (call 1)"
    assert jnp.allclose(out2, ref2, atol=5e-2, rtol=5e-2), \
        "bf16 path mismatch vs reference (call 2)"

    print("KERNEL_OK")
</pallas_src>

<mosaic_0001>
module attributes {stable_mosaic.version = 11 : i64} {
  func.func @_nrb_kernel_fullk(%arg0: i32, %arg1: i32, %arg2: memref<16x128xf32, #tpu.memory_space<vmem>>, %arg3: memref<128x128xf32, #tpu.memory_space<vmem>>, %arg4: memref<1x128xf32, #tpu.memory_space<vmem>>, %arg5: memref<16x128xf32, #tpu.memory_space<vmem>>, %arg6: memref<16x128xf32, #tpu.memory_space<vmem>>) attributes {dimension_semantics = [#tpu.dimension_semantics<parallel>, #tpu.dimension_semantics<parallel>], iteration_bounds = array<i64: 1, 1>, scalar_prefetch = 0 : i64, scratch_operands = 0 : i64, tpu.core_type = #tpu.core_type<tc>, window_params = [{transform_indices = @transform_0, window_bounds = array<i64: 16, 128>}, {transform_indices = @transform_1, window_bounds = array<i64: 128, 128>}, {transform_indices = @transform_2, window_bounds = array<i64: 1, 128>}, {transform_indices = @transform_3, window_bounds = array<i64: 16, 128>}, {transform_indices = @transform_4, window_bounds = array<i64: 16, 128>}]} {
    %c0 = arith.constant 0 : index
    %c0_0 = arith.constant 0 : index
    %0 = vector.load %arg2[%c0, %c0_0] : memref<16x128xf32, #tpu.memory_space<vmem>>, vector<16x128xf32>
    %c0_1 = arith.constant 0 : index
    %c0_2 = arith.constant 0 : index
    %1 = vector.load %arg3[%c0_1, %c0_2] : memref<128x128xf32, #tpu.memory_space<vmem>>, vector<128x128xf32>
    %cst = arith.constant dense<0.000000e+00> : vector<16x128xf32>
    %2 = tpu.matmul %0, %1, %cst {dimension_numbers = #tpu.dot_dimension_numbers<[1], [0], [0], [1], [0, 0, 1, 1], [], []>} : vector<16x128xf32>, vector<128x128xf32>, vector<16x128xf32> -> vector<16x128xf32>
    %c0_3 = arith.constant 0 : index
    %c0_4 = arith.constant 0 : index
    %3 = vector.load %arg4[%c0_3, %c0_4] : memref<1x128xf32, #tpu.memory_space<vmem>>, vector<1x128xf32>
    %4 = vector.broadcast %3 : vector<1x128xf32> to vector<16x128xf32>
    %5 = arith.addf %2, %4 : vector<16x128xf32>
    %cst_5 = arith.constant 0.000000e+00 : f32
    %6 = vector.broadcast %cst_5 : f32 to vector<16x128xf32>
    %7 = arith.maximumf %5, %6 : vector<16x128xf32>
    %c0_6 = arith.constant 0 : index
    %c0_7 = arith.constant 0 : index
    %8 = vector.load %arg5[%c0_6, %c0_7] : memref<16x128xf32, #tpu.memory_space<vmem>>, vector<16x128xf32>
    %9 = arith.addf %7, %8 : vector<16x128xf32>
    %c0_8 = arith.constant 0 : index
    %c0_9 = arith.constant 0 : index
    %10 = vector.load %arg6[%c0_8, %c0_9] : memref<16x128xf32, #tpu.memory_space<vmem>>, vector<16x128xf32>
    tpu.vector_store %arg6[%c0_8, %c0_9], %9 {strides = array<i32>} : memref<16x128xf32, #tpu.memory_space<vmem>>, vector<16x128xf32>,
    return
  }
  func.func @transform_0(%arg0: i32, %arg1: i32) -> (i32, i32) {
    %c0_i32 = arith.constant 0 : i32
    %c0_i32_0 = arith.constant 0 : i32
    return %arg0, %c0_i32 : i32, i32
  }
  func.func @transform_1(%arg0: i32, %arg1: i32) -> (i32, i32) {
    %c0_i32 = arith.constant 0 : i32
    %c0_i32_0 = arith.constant 0 : i32
    return %c0_i32, %arg1 : i32, i32
  }
  func.func @transform_2(%arg0: i32, %arg1: i32) -> (i32, i32) {
    %c0_i32 = arith.constant 0 : i32
    %c0_i32_0 = arith.constant 0 : i32
    return %c0_i32, %arg1 : i32, i32
  }
  func.func @transform_3(%arg0: i32, %arg1: i32) -> (i32, i32) {
    %c0_i32 = arith.constant 0 : i32
    return %arg0, %arg1 : i32, i32
  }
  func.func @transform_4(%arg0: i32, %arg1: i32) -> (i32, i32) {
    %c0_i32 = arith.constant 0 : i32
    return %arg0, %arg1 : i32, i32
  }
}

</mosaic_0001>

<bundles_post_ra>
// kernel: tpu_custom_call.1
= control target key start
LH: loop header
LB: loop body
LE: loop exit
PB: predicated region body
PF: predicated region fallthrough
CT: control target
= control target key end

     0   :  { %9 = vsyncpa [#allocation3], 0  ;;  %s321_s0 = inlined_call_operand.hbm [shape: f32[16,128], index: 0, kind: input, shape index: {}]   ;;  %s322_s1 = inlined_call_operand.hbm [shape: f32[128,128], index: 1, kind: input, shape index: {}]   ;;  %s323_s2 = inlined_call_operand.vmem [shape: f32[1,128], index: 2, kind: input, shape index: {}]   ;;  %s324_s3 = inlined_call_operand.hbm [shape: f32[16,128], index: 3, kind: input, shape index: {}]   ;;  %s325_s4 = inlined_call_operand.hbm [shape: f32[16,128], index: 4, kind: output, shape index: {}]  }
   0x1   :  { %10 = vsyncpa [#allocation6], 0 }
   0x2   :  { %11 = vsyncpa [#allocation4], 0  ;;  %s29_s17 = sshll.u32 %s322_s1, 4  ;;  %s263_s18 = smov [#allocation5]   ;;  %s30_s17 = int_to_ptr.hbm [resolvable:$true] %s29_s17 }
   0x3   :  { %s31_s19 = sshll.u32 %s263_s18, 4  ;;  %s16_s22 = sshll.u32 %s321_s0, 4  ;;  %s32_s19 = int_to_ptr.vmem [resolvable:$true] %s31_s19  ;;  %s17_s22 = int_to_ptr.hbm [resolvable:$true] %s16_s22 }
   0x4   :  { %s264_s23 = smov 128   ;;  %s265_s24 = smov 8  }
   0x5   :  { %37 = dma.hbm_to_vmem [thread:$0]  %s30_s17, 2048, %s32_s19, [#allocation6], %s264_s23, %s264_s23, %s265_s24  }
   0x6   :  { %s266_s25 = smov [#allocation2]   ;;  %s44_s1 = sshll.u32 %s324_s3, 4  ;;  %s45_s1 = int_to_ptr.hbm [resolvable:$true] %s44_s1 }
   0x7   :  { %s18_s26 = sshll.u32 %s266_s25, 4  ;;  %s267_s0 = smov [#allocation7]   ;;  %s19_s26 = int_to_ptr.vmem [resolvable:$true] %s18_s26 }
   0x8   :  { %24 = dma.hbm_to_vmem [thread:$0]  %s17_s22, 256, %s19_s26, [#allocation3], %s264_s23, %s264_s23, %s265_s24  }
   0x9   :  { %s46_s29 = sshll.u32 %s267_s0, 4  ;;  %s47_s29 = int_to_ptr.vmem [resolvable:$true] %s46_s29 }
   0xa   :  { %52 = dma.hbm_to_vmem [thread:$0]  %s45_s1, 256, %s47_s29, [#allocation6], %s264_s23, %s264_s23, %s265_s24  }
   0xb   :  { %257 = dma.done.wait [#allocation3], 256  }
   0xc   :  { %258 = vsyncadd [#allocation3], 4294967040 }
   0xd   :  { %259 = dma.done.wait [#allocation6], 2304  }
   0xe   :  { %260 = vsyncadd [#allocation6], 4294964992  ;;  %v82_v0 = vld [vmem:[#allocation5 + $0x78] sm:$0xff]  ;;  %v81_v1 = vld [vmem:[#allocation5 + $0x70] sm:$0xff]  ;;  %s268_s5 = smov [#allocation8]   ;;  %s124_s9 = sshll.u32 %s325_s4, 4  ;;  %s125_s9 = int_to_ptr.hbm [resolvable:$true] %s124_s9 }
   0xf   :  { %87 = vmatpush.msra.mxu0 %v82_v0  ;;  %138 = vmatpush.msra.mxu1 %v82_v0  ;;  %v80_v2 = vld [vmem:[#allocation5 + $0x68] sm:$0xff]  ;;  %v79_v3 = vld [vmem:[#allocation5 + $0x60] sm:$0xff]  ;;  %v78_v4 = vld [vmem:[#allocation5 + $0x58] sm:$0xff]  ;;  %s122_s6 = sshll.u32 %s268_s5, 4  ;;  %s123_s6 = int_to_ptr.vmem [resolvable:$true] %s122_s6 }
  0x10   :  { %v77_v5 = vld [vmem:[#allocation5 + $0x50] sm:$0xff]  ;;  %v76_v6 = vld [vmem:[#allocation5 + $0x48] sm:$0xff]  ;;  %v75_v7 = vld [vmem:[#allocation5 + $0x40] sm:$0xff] }
  0x11   :  { %88 = vmatpush.msra.mxu0 %v81_v1  ;;  %139 = vmatpush.msra.mxu1 %v81_v1  ;;  %v74_v8 = vld [vmem:[#allocation5 + $0x38] sm:$0xff]  ;;  %v73_v9 = vld [vmem:[#allocation5 + $0x30] sm:$0xff]  ;;  %v72_v10 = vld [vmem:[#allocation5 + $0x28] sm:$0xff] }
  0x12   :  { %v71_v11 = vld [vmem:[#allocation5 + $0x20] sm:$0xff]  ;;  %v70_v12 = vld [vmem:[#allocation5 + $0x18] sm:$0xff]  ;;  %v69_v13 = vld [vmem:[#allocation5 + $0x10] sm:$0xff] }
  0x13   :  { %89 = vmatpush.msra.mxu0 %v80_v2  ;;  %140 = vmatpush.msra.mxu1 %v80_v2  ;;  %v68_v14 = vld [vmem:[#allocation5 + $0x8] sm:$0xff]  ;;  %v67_v15 = vld [vmem:[#allocation5] sm:$0xff]  ;;  %v65_v16 = vld [vmem:[#allocation2] sm:$0xff] }
  0x14   :  { %v66_v17 = vld [vmem:[#allocation2 + $0x8] sm:$0xff]  ;;  %v160_v18 = vld [vmem:[%s323_s2] ss:$0 sm:$0xff]  ;;  %v112_v23 = vld [vmem:[#allocation7] sm:$0xff] }
  0x15   :  { %90 = vmatpush.msra.mxu0 %v79_v3  ;;  %141 = vmatpush.msra.mxu1 %v79_v3  ;;  %v113_v24 = vld [vmem:[#allocation7 + $0x8] sm:$0xff] }
  0x17   :  { %91 = vmatpush.msra.mxu0 %v78_v4  ;;  %142 = vmatpush.msra.mxu1 %v78_v4 }
  0x19   :  { %92 = vmatpush.msra.mxu0 %v77_v5  ;;  %143 = vmatpush.msra.mxu1 %v77_v5 }
  0x1b   :  { %93 = vmatpush.msra.mxu0 %v76_v6  ;;  %144 = vmatpush.msra.mxu1 %v76_v6 }
  0x1d   :  { %94 = vmatpush.msra.mxu0 %v75_v7  ;;  %145 = vmatpush.msra.mxu1 %v75_v7 }
  0x1f   :  { %95 = vmatpush.msra.mxu0 %v74_v8  ;;  %146 = vmatpush.msra.mxu1 %v74_v8 }
  0x21   :  { %96 = vmatpush.msra.mxu0 %v73_v9  ;;  %147 = vmatpush.msra.mxu1 %v73_v9 }
  0x23   :  { %97 = vmatpush.msra.mxu0 %v72_v10  ;;  %148 = vmatpush.msra.mxu1 %v72_v10 }
  0x25   :  { %98 = vmatpush.msra.mxu0 %v71_v11  ;;  %149 = vmatpush.msra.mxu1 %v71_v11 }
  0x27   :  { %99 = vmatpush.msra.mxu0 %v70_v12  ;;  %150 = vmatpush.msra.mxu1 %v70_v12 }
  0x29   :  { %100 = vmatpush.msra.mxu0 %v69_v13  ;;  %151 = vmatpush.msra.mxu1 %v69_v13 }
  0x2b   :  { %101 = vmatpush.msra.mxu0 %v68_v14  ;;  %152 = vmatpush.msra.mxu1 %v68_v14 }
  0x2d   :  { %102 = vmatpush.msra.mxu0 %v67_v15  ;;  %153 = vmatpush.msra.mxu1 %v67_v15 }
  0x2e   :  { %103 = vmatmul.f32.vlgmr.msra.gmra.mxu0 %v65_v16  ;;  %106 = vmatmul.f32.vlgmr.msra.gmra.mxu1 %v66_v17 }
  0xab   :  { %v104_v19 = vpop.f32.mrf.mxu0  ;;  %v107_v20 = vpop.f32.mrf.mxu1 }
  0xac   :  { %v105_v21 = vadd.f32 %v160_v18, %v104_v19  ;;  %v108_v22 = vadd.f32 %v160_v18, %v107_v20 }
  0xae   :  { %v110_v25 = vmax.f32 %v105_v21, 0.0  ;;  %v111_v26 = vmax.f32 %v108_v22, 0.0 }
  0xb0   :  { %v114_v27 = vadd.f32 %v112_v23, %v110_v25  ;;  %v115_v28 = vadd.f32 %v113_v24, %v111_v26 }
  0xb2   :  { %116 = vst [vmem:[#allocation8] sm:$0xff] %v114_v27 }
  0xb3   :  { %117 = vst [vmem:[#allocation8 + $0x8] sm:$0xff] %v115_v28 }
  0xb4   :  { %130 = dma.vmem_to_hbm [thread:$0]  %s123_s6, 256, %s125_s9, [#allocation4], %s264_s23, %s264_s23, %s265_s24  }
  0xb5   :  { %261 = dma.done.wait [#allocation4], 256  }
  0xb6   :  { %262 = vsyncadd [#allocation4], 4294967040 }
  0xb7   :  { %135 = vsyncpa [#allocation3], 1 }
  0xb8   :  { %136 = vsyncpa [#allocation6], 1 }
  0xb9   :  { %137 = vsyncpa [#allocation4], 1 }

</bundles_post_ra>
